<compile_context>
chip_gen: v7x
topology: tpu7x:2x2x1
jax: 0.10.0
libtpu: 0.0.40
codegen_flags: <defaults>
</compile_context>

<pallas_src>
import functools

import jax
import jax.numpy as jnp
from jax.experimental import pallas as pl
from jax.experimental.pallas import tpu as pltpu


def _round_up(n, m):
    return ((n + m - 1) // m) * m


def _ce_label_smooth_kernel(x_ref, t_ref, o_ref, *, epsilon, batch_size):
    """Per-batch-tile partial sum of label-smoothed CE (sum over valid rows)."""
    x = x_ref[...].astype(jnp.float32)            # (Tb, C) logits, cast on load
    t = t_ref[...]                                # (Tb, 1) int32 labels
    Tb, C = x.shape

    # Mask rows that fall past the true batch size (ragged last tile).  Mask the
    # logits themselves so padded garbage can't poison exp/max.
    base = pl.program_id(0) * Tb
    row_ids = base + jax.lax.broadcasted_iota(jnp.int32, (Tb, 1), 0)
    valid = row_ids < batch_size                  # (Tb, 1) bool
    x = jnp.where(valid, x, 0.0)

    # Stable logsumexp pieces (EUP handles exp/log; XLU handles the reductions).
    m = jnp.max(x, axis=1, keepdims=True)         # (Tb, 1)
    z = x - m                                     # (Tb, C)
    lse = jnp.log(jnp.sum(jnp.exp(z), axis=1, keepdims=True))  # (Tb, 1)

    # Target-class logit via iota compare (vectorized; no scatter / no gather loop).
    class_ids = jax.lax.broadcasted_iota(jnp.int32, (Tb, C), 1)
    z_t = jnp.sum(jnp.where(class_ids == t, z, 0.0), axis=1, keepdims=True)  # (Tb, 1)
    sum_z = jnp.sum(z, axis=1, keepdims=True)                                # (Tb, 1)

    # sum_c(-((1-eps)*onehot + eps) * (z - lse)), collapsed:
    per_sample = (-(1.0 - epsilon) * (z_t - lse)
                  - epsilon * (sum_z - jnp.float32(C) * lse))                # (Tb, 1)
    per_sample = jnp.where(valid, per_sample, 0.0)

    partial = jnp.sum(per_sample, axis=0, keepdims=True)                     # (1, 1)
    o_ref[...] = jnp.broadcast_to(partial.reshape(1, 1, 1), o_ref.shape)


def cross_entropy_label_smooth(inputs, targets, epsilon=0.05, tile_b=256):
    """inputs: (B, C) float logits (any float dtype); targets: (B,) int labels -> scalar f32 loss."""
    B, C = inputs.shape
    # Batch tile: multiple of 8 sublanes; shrink to (padded) B for small batches.
    tile_b = max(8, min(_round_up(tile_b, 8), _round_up(B, 8)))
    num_tiles = (B + tile_b - 1) // tile_b

    t2 = targets.astype(jnp.int32).reshape(B, 1)

    # TODO(synk): for very large num_classes (LLM vocab), add a second grid axis
    # over C with an online logsumexp; here a full row of C classes is one block.
    partials = pl.pallas_call(
        functools.partial(_ce_label_smooth_kernel,
                          epsilon=float(epsilon), batch_size=B),
        out_shape=jax.ShapeDtypeStruct((num_tiles, 8, 128), jnp.float32),
        grid=(num_tiles,),
        in_specs=[
            pl.BlockSpec((tile_b, C), lambda i: (i, 0)),   # logits, native dtype
            pl.BlockSpec((tile_b, 1), lambda i: (i, 0)),   # int32 labels
        ],
        out_specs=pl.BlockSpec((1, 8, 128), lambda i: (i, 0, 0)),
        compiler_params=pltpu.CompilerParams(
            dimension_semantics=("parallel",),
            vmem_limit_bytes=32 * 1024 * 1024,
        ),
    )(inputs, t2)

    # Tiny final reduction over per-tile partial sums; divide by the TRUE batch size.
    return jnp.sum(partials[:, 0, 0]) / jnp.float32(B)


def _reference(inputs, targets, epsilon=0.05):
    log_probs = jax.nn.log_softmax(inputs.astype(jnp.float32), axis=1)
    onehot = jax.nn.one_hot(targets, inputs.shape[1], dtype=jnp.float32)
    smoothed = (1.0 - epsilon) * onehot + epsilon
    return jnp.mean(jnp.sum(-smoothed * log_probs, axis=1))


if __name__ == "__main__":
    key = jax.random.PRNGKey(0)
    k1, k2, k3, k4 = jax.random.split(key, 4)

    # Test 1: single tile.
    B, C = 8, 32
    logits = jax.random.normal(k1, (B, C), dtype=jnp.float32)
    labels = jax.random.randint(k2, (B,), 0, C, dtype=jnp.int32)
    loss = jax.block_until_ready(cross_entropy_label_smooth(logits, labels, epsilon=0.05))
    ref = _reference(logits, labels, epsilon=0.05)
    assert jnp.allclose(loss, ref, rtol=1e-4, atol=1e-4), (loss, ref)

    # Test 2: multiple batch tiles + ragged last tile (exercises grid + masking).
    B2, C2 = 10, 32
    logits2 = jax.random.normal(k3, (B2, C2), dtype=jnp.float32)
    labels2 = jax.random.randint(k4, (B2,), 0, C2, dtype=jnp.int32)
    loss2 = jax.block_until_ready(
        cross_entropy_label_smooth(logits2, labels2, epsilon=0.05, tile_b=8))
    ref2 = _reference(logits2, labels2, epsilon=0.05)
    assert jnp.allclose(loss2, ref2, rtol=1e-4, atol=1e-4), (loss2, ref2)

    print("KERNEL_OK")
</pallas_src>

<mosaic_0001>
module attributes {stable_mosaic.version = 11 : i64} {
  func.func @_ce_label_smooth_kernel(%arg0: i32, %arg1: memref<8x32xf32, #tpu.memory_space<vmem>>, %arg2: memref<8x1xi32, #tpu.memory_space<vmem>>, %arg3: memref<1x8x128xf32, #tpu.memory_space<vmem>>) attributes {dimension_semantics = [#tpu.dimension_semantics<parallel>], iteration_bounds = array<i64: 1>, scalar_prefetch = 0 : i64, scratch_operands = 0 : i64, tpu.core_type = #tpu.core_type<tc>, window_params = [{transform_indices = @transform_0, window_bounds = array<i64: 8, 32>}, {transform_indices = @transform_1, window_bounds = array<i64: 8, 1>}, {transform_indices = @transform_2, window_bounds = array<i64: 1, 8, 128>}]} {
    %c0 = arith.constant 0 : index
    %c0_0 = arith.constant 0 : index
    %0 = vector.load %arg1[%c0, %c0_0] : memref<8x32xf32, #tpu.memory_space<vmem>>, vector<8x32xf32>
    %c0_1 = arith.constant 0 : index
    %c0_2 = arith.constant 0 : index
    %1 = vector.load %arg2[%c0_1, %c0_2] : memref<8x1xi32, #tpu.memory_space<vmem>>, vector<8x1xi32>
    %c8_i32 = arith.constant 8 : i32
    %2 = arith.muli %arg0, %c8_i32 : i32
    %3 = tpu.iota {dimensions = array<i32: 0>} : vector<8x1xi32>
    %4 = vector.broadcast %2 : i32 to vector<8x1xi32>
    %5 = arith.addi %4, %3 : vector<8x1xi32>
    %c8_i32_3 = arith.constant 8 : i32
    %6 = vector.broadcast %c8_i32_3 : i32 to vector<8x1xi32>
    %7 = arith.cmpi slt, %5, %6 : vector<8x1xi32>
    %cst = arith.constant 0.000000e+00 : f32
    %8 = vector.shape_cast %7 : vector<8x1xi1> to vector<8x1xi1>
    %9 = vector.broadcast %8 : vector<8x1xi1> to vector<8x32xi1>
    %10 = vector.broadcast %cst : f32 to vector<8x32xf32>
    %11 = arith.select %9, %0, %10 : vector<8x32xi1>, vector<8x32xf32>
    %cst_4 = arith.constant dense<0xFF800000> : vector<8xf32>
    %12 = vector.multi_reduction <maximumf>, %11, %cst_4 [1] : vector<8x32xf32> to vector<8xf32>
    %13 = vector.shape_cast %12 : vector<8xf32> to vector<8x1xf32>
    %14 = vector.broadcast %13 : vector<8x1xf32> to vector<8x32xf32>
    %15 = arith.subf %11, %14 : vector<8x32xf32>
    %16 = math.exp %15 : vector<8x32xf32>
    %cst_5 = arith.constant dense<0.000000e+00> : vector<8xf32>
    %17 = vector.multi_reduction <add>, %16, %cst_5 [1] : vector<8x32xf32> to vector<8xf32>
    %18 = vector.shape_cast %17 : vector<8xf32> to vector<8x1xf32>
    %19 = math.log %18 : vector<8x1xf32>
    %20 = tpu.iota {dimensions = array<i32: 1>} : vector<8x32xi32>
    %21 = vector.broadcast %1 : vector<8x1xi32> to vector<8x32xi32>
    %22 = arith.cmpi eq, %20, %21 : vector<8x32xi32>
    %cst_6 = arith.constant 0.000000e+00 : f32
    %23 = vector.broadcast %cst_6 : f32 to vector<8x32xf32>
    %24 = arith.select %22, %15, %23 : vector<8x32xi1>, vector<8x32xf32>
    %cst_7 = arith.constant dense<0.000000e+00> : vector<8xf32>
    %25 = vector.multi_reduction <add>, %24, %cst_7 [1] : vector<8x32xf32> to vector<8xf32>
    %26 = vector.shape_cast %25 : vector<8xf32> to vector<8x1xf32>
    %cst_8 = arith.constant dense<0.000000e+00> : vector<8xf32>
    %27 = vector.multi_reduction <add>, %15, %cst_8 [1] : vector<8x32xf32> to vector<8xf32>
    %28 = vector.shape_cast %27 : vector<8xf32> to vector<8x1xf32>
    %29 = arith.subf %26, %19 : vector<8x1xf32>
    %cst_9 = arith.constant -0.949999988 : f32
    %30 = vector.broadcast %cst_9 : f32 to vector<8x1xf32>
    %31 = arith.mulf %30, %29 : vector<8x1xf32>
    %cst_10 = arith.constant 3.200000e+01 : f32
    %32 = vector.broadcast %cst_10 : f32 to vector<8x1xf32>
    %33 = arith.mulf %32, %19 : vector<8x1xf32>
    %34 = arith.subf %28, %33 : vector<8x1xf32>
    %cst_11 = arith.constant 5.000000e-02 : f32
    %35 = vector.broadcast %cst_11 : f32 to vector<8x1xf32>
    %36 = arith.mulf %35, %34 : vector<8x1xf32>
    %37 = arith.subf %31, %36 : vector<8x1xf32>
    %cst_12 = arith.constant 0.000000e+00 : f32
    %38 = vector.broadcast %cst_12 : f32 to vector<8x1xf32>
    %39 = arith.select %7, %37, %38 : vector<8x1xi1>, vector<8x1xf32>
    %cst_13 = arith.constant dense<0.000000e+00> : vector<1xf32>
    %40 = vector.multi_reduction <add>, %39, %cst_13 [0] : vector<8x1xf32> to vector<1xf32>
    %41 = vector.shape_cast %40 : vector<1xf32> to vector<1x1xf32>
    %42 = vector.shape_cast %41 : vector<1x1xf32> to vector<1x1x1xf32>
    %43 = vector.shape_cast %42 : vector<1x1x1xf32> to vector<1x1x1xf32>
    %44 = vector.broadcast %43 : vector<1x1x1xf32> to vector<1x8x128xf32>
    %c0_14 = arith.constant 0 : index
    %c0_15 = arith.constant 0 : index
    %c0_16 = arith.constant 0 : index
    %45 = vector.load %arg3[%c0_14, %c0_15, %c0_16] : memref<1x8x128xf32, #tpu.memory_space<vmem>>, vector<1x8x128xf32>
    tpu.vector_store %arg3[%c0_14, %c0_15, %c0_16], %44 {strides = array<i32>} : memref<1x8x128xf32, #tpu.memory_space<vmem>>, vector<1x8x128xf32>,
    return
  }
  func.func @transform_0(%arg0: i32) -> (i32, i32) {
    %c0_i32 = arith.constant 0 : i32
    %c0_i32_0 = arith.constant 0 : i32
    return %arg0, %c0_i32 : i32, i32
  }
  func.func @transform_1(%arg0: i32) -> (i32, i32) {
    %c0_i32 = arith.constant 0 : i32
    %c0_i32_0 = arith.constant 0 : i32
    return %arg0, %c0_i32 : i32, i32
  }
  func.func @transform_2(%arg0: i32) -> (i32, i32, i32) {
    %c0_i32 = arith.constant 0 : i32
    %c0_i32_0 = arith.constant 0 : i32
    %c0_i32_1 = arith.constant 0 : i32
    return %arg0, %c0_i32, %c0_i32_0 : i32, i32, i32
  }
}

</mosaic_0001>

<bundles_post_ra>
// kernel: tpu_custom_call.1
= control target key start
LH: loop header
LB: loop body
LE: loop exit
PB: predicated region body
PF: predicated region fallthrough
CT: control target
= control target key end

     0   :  { %vm23_vm0 = vcmask 261120   ;;  %s146_s0 = inlined_call_operand.vmem [shape: f32[8,32], index: 0, kind: input, shape index: {}]   ;;  %s147_s1 = inlined_call_operand.vmem [shape: s32[8,1], index: 1, kind: input, shape index: {}]   ;;  %s148_s2 = inlined_call_operand.hbm [shape: f32[1,8,128], index: 2, kind: output, shape index: {}]  }
   0x1   :  { %v12_v0 = vld [vmem:[%s146_s0] sm:$0xff] }
   0x2   :  { %7 = vsyncpa [#allocation3], 0  ;;  %v24_v1 = vsel %vm23_vm0, %v12_v0, -inf  ;;  %v107_v2 = vmov 0   ;;  %v13_v3 = vld [vmem:[%s147_s1] sm:$0xff]  ;;  %v35_v7 = vlaneseq  ;;  %s108_s0 = smov [#allocation2]  }
   0x3   :  { %78 = vset.pattern.permute.xlu0 %v107_v2  ;;  %s68_s1 = sshll.u32 %s108_s0, 4  ;;  %s69_s1 = int_to_ptr.vmem [resolvable:$true] %s68_s1 }
   0x4   :  { %25 = vmax.xlane.f32.xlu0 %v24_v1  ;;  %v36_v8 = vand.u32 127, %v35_v7  ;;  %s83_s13 = scalar_lea.vmem %s69_s1, 128  ;;  %p88_p1 = scmp.lt.s32.totalorder %s69_s1, %s69_s1 }
   0x5   :  { %p84_p0 = scmp.ne.s32.totalorder %s69_s1, %s83_s13  ;;  %p89_p2 = scmp.lt.s32.totalorder %s83_s13, %s83_s13 }
   0x7   :  { %p90_p3 = por %p89_p2, %p88_p1 }
   0x9   :  { %p91_p4 = pnand %p90_p3, %p84_p0 }
  0x1a   :  { %38 = vperm.xlu0 %78, %v13_v3  }
  0x91   :  { %v26_v4 = vpop.xlane.xlu0 %25 }
  0x92   :  { %v27_v5 = vsub.f32 %v12_v0, %v26_v4 }
  0x94   :  { %v28_v6 = vmul.f32 1.442695, %v27_v5  ;;  %v45_v14 = vsel %vm23_vm0, %v27_v5, 0.0 }
  0x96   :  { %79 = vpow2.f32 %v28_v6 }
  0x99   :  { %v39_v9 = vpop.permute.xlu0 %38 }
  0x9a   :  { %vm40_vm1 = vcmp.eq.s32.totalorder %v36_v8, %v39_v9 }
  0x9b   :  { %v41_v12 = vsel %vm40_vm1, %v27_v5, 0.0 }
  0x9c   :  { %v42_v13 = vsel %vm23_vm0, %v41_v12, 0.0 }
  0xa0   :  { %v80_v10 = vpop.eup %79 }
  0xa1   :  { %v30_v11 = vsel %vm23_vm0, %v80_v10, 0.0 }
  0xa2   :  { %31 = vadd.xlane.f32.xlu1 %v30_v11 }
  0xa6   :  { %43 = vadd.xlane.f32.xlu1 %v42_v13 }
  0xaa   :  { %46 = vadd.xlane.f32.xlu1 %v45_v14 }
 0x12f   :  { %v32_v15 = vpop.xlane.xlu1 %31 }
 0x130   :  { %81 = vlog2.f32 %v32_v15 }
 0x133   :  { %v44_v16 = vpop.xlane.xlu1 %43 }
 0x137   :  { %v47_v21 = vpop.xlane.xlu1 %46 }
 0x13a   :  { %v82_v17 = vpop.eup %81 }
 0x13b   :  { %v34_v18 = vmul.f32 0.6931472, %v82_v17 }
 0x13d   :  { %v48_v19 = vsub.f32 %v44_v16, %v34_v18  ;;  %v50_v20 = vmul.f32 32.0, %v34_v18 }
 0x13f   :  { %v51_v22 = vsub.f32 %v47_v21, %v50_v20  ;;  %v49_v23 = vmul.f32 -0.95, %v48_v19 }
 0x141   :  { %v52_v24 = vmul.f32 0.05, %v51_v22 }
 0x143   :  { %v53_v25 = vsub.f32 %v49_v23, %v52_v24 }
 0x145   :  { %v55_v26 = vrot.slane %v53_v25, 4 }
 0x147   :  { %v56_v27 = vadd.f32 %v55_v26, %v53_v25 }
 0x149   :  { %v57_v28 = vrot.slane %v56_v27, 2 }
 0x14b   :  { %v58_v29 = vadd.f32 %v57_v28, %v56_v27 }
 0x14d   :  { %v59_v30 = vrot.slane %v58_v29, 1 }
 0x14f   :  { %v60_v31 = vadd.f32 %v59_v30, %v58_v29 }
 0x151   :  { %61 = vst [vmem:[#allocation2] sm:$0xff] %v60_v31 }
 0x152   :  { %94 = shalt.err (!%p91_p4)
}
 0x153   :  { %s95_s16 = scalar_lea.hbm %s148_s2, 128 }
 0x154   :  { %p96_p5 = scmp.ne.s32.totalorder %s148_s2, %s95_s16  ;;  %p99_p6 = scmp.lt.u32.totalorder %s95_s16, %s148_s2 }
 0x156   :  { %p101_p7 = pnand %p99_p6, %p96_p5 }
 0x158   :  { %104 = shalt.err (!%p101_p7)
}
 0x159   :  { %71 = dma.vmem_to_hbm [thread:$0]  %s69_s1, 128, %s148_s2, [#allocation3]  }
 0x15a   :  { %105 = dma.done.wait [#allocation3], 128  }
 0x15b   :  { %106 = vsyncadd [#allocation3], 4294967168 }
 0x15c   :  { %75 = vsyncpa [#allocation3], 1 }

</bundles_post_ra>
